<compile_context>
chip_gen: v6e
topology: v6e:2x2x1
jax: 0.10.0
libtpu: 0.0.40
codegen_flags: <defaults>
</compile_context>

<pallas_src>
import functools

import jax
import jax.numpy as jnp
from jax.experimental import pallas as pl
from jax.experimental.pallas import tpu as pltpu


def _round_up(x, m):
    return ((x + m - 1) // m) * m


# ------------------------------- fused kernel --------------------------------

def _simhgcl_fused_kernel(*refs, hidden, num_channels):
    nc = num_channels
    feat_refs = refs[0:nc]
    adv_refs = refs[nc:2 * nc]
    pw_refs = refs[2 * nc:3 * nc]
    pb_refs = refs[3 * nc:4 * nc]
    (fuse_w_ref, fuse_b_ref, w1_ref, b1_ref,
     w2c_ref, w2a_ref, b2w_ref, o_ref) = refs[4 * nc:]

    def encode(x_refs):
        # Stand-in SeHGNN encoder: per-metapath Linear+ReLU, then a fusion Linear
        # written as a sum of partial matmuls against static slices of fuse_w
        # (no concat, everything accumulated in registers/VMEM).
        acc = None
        for c in range(nc):
            x = x_refs[c][...]
            h = jnp.dot(x, pw_refs[c][...], preferred_element_type=jnp.float32)
            h = jnp.maximum(h + pb_refs[c][...], 0.0)
            part = jnp.dot(h, fuse_w_ref[c * hidden:(c + 1) * hidden, :],
                           preferred_element_type=jnp.float32)
            acc = part if acc is None else acc + part
        return acc + fuse_b_ref[...]

    def proj_head(x, w2_ref):
        # Linear -> ReLU -> Linear; the final Linear is pre-padded to the
        # lane-dense output width so clean / adversarial results land in
        # disjoint column bands of the same output slab.
        h = jnp.dot(x, w1_ref[...], preferred_element_type=jnp.float32)
        h = jnp.maximum(h + b1_ref[...], 0.0)
        return jnp.dot(h, w2_ref[...], preferred_element_type=jnp.float32)

    y_wide = proj_head(encode(feat_refs), w2c_ref)
    adv_wide = proj_head(encode(adv_refs), w2a_ref)
    o_ref[...] = (y_wide + adv_wide + b2w_ref[...]).astype(o_ref.dtype)


# ------------------------------ model forward --------------------------------

def gen_ran_input(feats, noise_key, eta, feat_keys):
    """adv_feats[k] = feats[k] + N(0, eta) -- mirrors simhgcl.gen_ran_input."""
    adv = {}
    for i, k in enumerate(feat_keys):
        nk = jax.random.fold_in(noise_key, i)
        adv[k] = feats[k] + eta * jax.random.normal(nk, feats[k].shape,
                                                    feats[k].dtype)
    return adv


def simhgcl_forward(params, feats, noise_key, eta, feat_keys, hidden):
    keys = tuple(feat_keys)
    nc = len(keys)
    N = feats[keys[0]].shape[0]
    tm = N if N <= 256 else 256
    assert N % tm == 0, "node count must be a multiple of the row tile"

    adv_feats = gen_ran_input(feats, noise_key, eta, keys)

    d_enc = params["fuse_w"].shape[1]
    out_w = _round_up(2 * hidden, 128)

    # Zero-padded copies of the final projection -> single lane-dense output slab:
    # cols [0, H) hold y, cols [H, 2H) hold adv_y.
    w2 = params["ph_w2"]
    b2 = params["ph_b2"].reshape(1, hidden)
    w2c = jnp.zeros((hidden, out_w), jnp.float32).at[:, :hidden].set(w2)
    w2a = jnp.zeros((hidden, out_w), jnp.float32).at[:, hidden:2 * hidden].set(w2)
    b2w = (jnp.zeros((1, out_w), jnp.float32)
           .at[:, :hidden].set(b2)
           .at[:, hidden:2 * hidden].set(b2))

    feat_list = [feats[k] for k in keys]
    adv_list = [adv_feats[k] for k in keys]
    pw_list = [params["proj_w"][k] for k in keys]
    pb_list = [params["proj_b"][k].reshape(1, hidden) for k in keys]
    fuse_b = params["fuse_b"].reshape(1, d_enc)
    b1 = params["ph_b1"].reshape(1, hidden)
    wide_list = [params["fuse_w"], fuse_b, params["ph_w1"], b1, w2c, w2a, b2w]

    def row_spec(dcols):
        return pl.BlockSpec((tm, dcols), lambda i: (i, 0))

    def full_spec(t):
        return pl.BlockSpec(t.shape, lambda i: (0, 0))

    in_specs = ([row_spec(f.shape[1]) for f in feat_list]
                + [row_spec(f.shape[1]) for f in adv_list]
                + [full_spec(t) for t in pw_list]
                + [full_spec(t) for t in pb_list]
                + [full_spec(t) for t in wide_list])

    kernel = functools.partial(_simhgcl_fused_kernel, hidden=hidden,
                               num_channels=nc)

    out = pl.pallas_call(
        kernel,
        out_shape=jax.ShapeDtypeStruct((N, out_w), jnp.float32),
        grid_spec=pltpu.PrefetchScalarGridSpec(
            num_scalar_prefetch=0,
            grid=(N // tm,),
            in_specs=in_specs,
            out_specs=pl.BlockSpec((tm, out_w), lambda i: (i, 0)),
        ),
        compiler_params=pltpu.CompilerParams(
            dimension_semantics=("parallel",)),
    )(*feat_list, *adv_list, *pw_list, *pb_list, *wide_list)

    return out[:, :hidden], out[:, hidden:2 * hidden]


# --------------------------- parameter construction --------------------------

def _xavier_uniform(key, din, dout):
    a = (6.0 / (din + dout)) ** 0.5
    return jax.random.uniform(key, (din, dout), jnp.float32, minval=-a, maxval=a)


def init_params(key, feat_keys, data_size, hidden):
    num_layers = max(len(k) - 1 for k in feat_keys)
    num_channels = len(feat_keys)
    d_enc_out = hidden * (num_layers + num_channels - 1)

    params = {"proj_w": {}, "proj_b": {}}
    for i, k in enumerate(feat_keys):
        din = data_size[k[-1]]
        params["proj_w"][k] = _xavier_uniform(jax.random.fold_in(key, i), din, hidden)
        params["proj_b"][k] = jnp.zeros((hidden,), jnp.float32)

    params["fuse_w"] = _xavier_uniform(jax.random.fold_in(key, 100),
                                       num_channels * hidden, d_enc_out)
    params["fuse_b"] = jnp.zeros((d_enc_out,), jnp.float32)

    # proj_head = Linear(d_enc_out, hidden) -> ReLU -> Linear(hidden, hidden)
    # init_emb(): xavier_uniform weights, zero bias.
    params["ph_w1"] = _xavier_uniform(jax.random.fold_in(key, 200), d_enc_out, hidden)
    params["ph_b1"] = jnp.zeros((hidden,), jnp.float32)
    params["ph_w2"] = _xavier_uniform(jax.random.fold_in(key, 201), hidden, hidden)
    params["ph_b2"] = jnp.zeros((hidden,), jnp.float32)
    return params


# ------------------------------ pure-JAX reference ---------------------------

def _reference_path(params, feats, feat_keys):
    hs = [jnp.maximum(feats[k] @ params["proj_w"][k] + params["proj_b"][k], 0.0)
          for k in feat_keys]
    h = jnp.concatenate(hs, axis=1)
    x = h @ params["fuse_w"] + params["fuse_b"]
    h1 = jnp.maximum(x @ params["ph_w1"] + params["ph_b1"], 0.0)
    return h1 @ params["ph_w2"] + params["ph_b2"]


# ----------------------------------- main ------------------------------------

if __name__ == "__main__":
    key = jax.random.PRNGKey(0)

    hidden = 32
    N = 16                                   # number of target nodes
    eta = 0.1                                # args.eta
    feat_keys = ("P", "PA", "PAP")           # metapaths ending at node types P / A
    data_size = {"P": 16, "A": 24}           # raw feature dims per node type

    params = init_params(jax.random.fold_in(key, 1), feat_keys, data_size, hidden)

    feats = {}
    for i, k in enumerate(feat_keys):
        feats[k] = jax.random.normal(jax.random.fold_in(key, 10 + i),
                                     (N, data_size[k[-1]]), jnp.float32)

    noise_key = jax.random.fold_in(key, 999)
    y, adv_y = simhgcl_forward(params, feats, noise_key=noise_key, eta=eta,
                               feat_keys=feat_keys, hidden=hidden)
    jax.block_until_ready((y, adv_y))

    assert y.shape == (N, hidden) and adv_y.shape == (N, hidden)
    assert bool(jnp.all(jnp.isfinite(y))) and bool(jnp.all(jnp.isfinite(adv_y)))

    # Clean path is deterministic -> check against a pure-JAX reference.
    y_ref = _reference_path(params, feats, feat_keys)
    assert float(jnp.max(jnp.abs(y - y_ref))) < 1e-2

    # Adversarial path: same noise is reproducible from the key -> exact reference.
    adv_feats_ref = gen_ran_input(feats, noise_key, eta, feat_keys)
    adv_ref = _reference_path(params, adv_feats_ref, feat_keys)
    assert float(jnp.max(jnp.abs(adv_y - adv_ref))) < 1e-2
    # Adversarial path must actually carry injected noise.
    assert float(jnp.mean(jnp.abs(adv_y - y))) > 1e-6

    print("KERNEL_OK")
</pallas_src>

<mosaic_0001>
module attributes {stable_mosaic.version = 11 : i64} {
  func.func @_simhgcl_fused_kernel(%arg0: i32, %arg1: memref<16x16xf32, #tpu.memory_space<vmem>>, %arg2: memref<16x24xf32, #tpu.memory_space<vmem>>, %arg3: memref<16x16xf32, #tpu.memory_space<vmem>>, %arg4: memref<16x16xf32, #tpu.memory_space<vmem>>, %arg5: memref<16x24xf32, #tpu.memory_space<vmem>>, %arg6: memref<16x16xf32, #tpu.memory_space<vmem>>, %arg7: memref<16x32xf32, #tpu.memory_space<vmem>>, %arg8: memref<24x32xf32, #tpu.memory_space<vmem>>, %arg9: memref<16x32xf32, #tpu.memory_space<vmem>>, %arg10: memref<1x32xf32, #tpu.memory_space<vmem>>, %arg11: memref<1x32xf32, #tpu.memory_space<vmem>>, %arg12: memref<1x32xf32, #tpu.memory_space<vmem>>, %arg13: memref<96x128xf32, #tpu.memory_space<vmem>>, %arg14: memref<1x128xf32, #tpu.memory_space<vmem>>, %arg15: memref<128x32xf32, #tpu.memory_space<vmem>>, %arg16: memref<1x32xf32, #tpu.memory_space<vmem>>, %arg17: memref<32x128xf32, #tpu.memory_space<vmem>>, %arg18: memref<32x128xf32, #tpu.memory_space<vmem>>, %arg19: memref<1x128xf32, #tpu.memory_space<vmem>>, %arg20: memref<16x128xf32, #tpu.memory_space<vmem>>) attributes {dimension_semantics = [#tpu.dimension_semantics<parallel>], iteration_bounds = array<i64: 1>, scalar_prefetch = 0 : i64, scratch_operands = 0 : i64, tpu.core_type = #tpu.core_type<tc>, window_params = [{transform_indices = @transform_0, window_bounds = array<i64: 16, 16>}, {transform_indices = @transform_1, window_bounds = array<i64: 16, 24>}, {transform_indices = @transform_2, window_bounds = array<i64: 16, 16>}, {transform_indices = @transform_3, window_bounds = array<i64: 16, 16>}, {transform_indices = @transform_4, window_bounds = array<i64: 16, 24>}, {transform_indices = @transform_5, window_bounds = array<i64: 16, 16>}, {pipeline_mode = #tpu.pipeline_mode<synchronous>, transform_indices = @transform_6, window_bounds = array<i64: 16, 32>}, {pipeline_mode = #tpu.pipeline_mode<synchronous>, transform_indices = @transform_7, window_bounds = array<i64: 24, 32>}, {pipeline_mode = #tpu.pipeline_mode<synchronous>, transform_indices = @transform_8, window_bounds = array<i64: 16, 32>}, {pipeline_mode = #tpu.pipeline_mode<synchronous>, transform_indices = @transform_9, window_bounds = array<i64: 1, 32>}, {pipeline_mode = #tpu.pipeline_mode<synchronous>, transform_indices = @transform_10, window_bounds = array<i64: 1, 32>}, {pipeline_mode = #tpu.pipeline_mode<synchronous>, transform_indices = @transform_11, window_bounds = array<i64: 1, 32>}, {pipeline_mode = #tpu.pipeline_mode<synchronous>, transform_indices = @transform_12, window_bounds = array<i64: 96, 128>}, {pipeline_mode = #tpu.pipeline_mode<synchronous>, transform_indices = @transform_13, window_bounds = array<i64: 1, 128>}, {pipeline_mode = #tpu.pipeline_mode<synchronous>, transform_indices = @transform_14, window_bounds = array<i64: 128, 32>}, {pipeline_mode = #tpu.pipeline_mode<synchronous>, transform_indices = @transform_15, window_bounds = array<i64: 1, 32>}, {pipeline_mode = #tpu.pipeline_mode<synchronous>, transform_indices = @transform_16, window_bounds = array<i64: 32, 128>}, {pipeline_mode = #tpu.pipeline_mode<synchronous>, transform_indices = @transform_17, window_bounds = array<i64: 32, 128>}, {pipeline_mode = #tpu.pipeline_mode<synchronous>, transform_indices = @transform_18, window_bounds = array<i64: 1, 128>}, {transform_indices = @transform_19, window_bounds = array<i64: 16, 128>}]} {
    %c0 = arith.constant 0 : index
    %c0_0 = arith.constant 0 : index
    %0 = vector.load %arg1[%c0, %c0_0] : memref<16x16xf32, #tpu.memory_space<vmem>>, vector<16x16xf32>
    %c0_1 = arith.constant 0 : index
    %c0_2 = arith.constant 0 : index
    %1 = vector.load %arg7[%c0_1, %c0_2] : memref<16x32xf32, #tpu.memory_space<vmem>>, vector<16x32xf32>
    %cst = arith.constant dense<0.000000e+00> : vector<16x32xf32>
    %2 = tpu.matmul %0, %1, %cst {dimension_numbers = #tpu.dot_dimension_numbers<[1], [0], [0], [1], [0, 0, 1, 1], [], []>} : vector<16x16xf32>, vector<16x32xf32>, vector<16x32xf32> -> vector<16x32xf32>
    %c0_3 = arith.constant 0 : index
    %c0_4 = arith.constant 0 : index
    %3 = vector.load %arg10[%c0_3, %c0_4] : memref<1x32xf32, #tpu.memory_space<vmem>>, vector<1x32xf32>
    %4 = vector.broadcast %3 : vector<1x32xf32> to vector<16x32xf32>
    %5 = arith.addf %2, %4 : vector<16x32xf32>
    %cst_5 = arith.constant 0.000000e+00 : f32
    %6 = vector.broadcast %cst_5 : f32 to vector<16x32xf32>
    %7 = arith.maximumf %5, %6 : vector<16x32xf32>
    %c0_6 = arith.constant 0 : index
    %c0_7 = arith.constant 0 : index
    %8 = vector.load %arg13[%c0_6, %c0_7] : memref<96x128xf32, #tpu.memory_space<vmem>>, vector<32x128xf32>
    %cst_8 = arith.constant dense<0.000000e+00> : vector<16x128xf32>
    %9 = tpu.matmul %7, %8, %cst_8 {dimension_numbers = #tpu.dot_dimension_numbers<[1], [0], [0], [1], [0, 0, 1, 1], [], []>} : vector<16x32xf32>, vector<32x128xf32>, vector<16x128xf32> -> vector<16x128xf32>
    %c0_9 = arith.constant 0 : index
    %c0_10 = arith.constant 0 : index
    %10 = vector.load %arg2[%c0_9, %c0_10] : memref<16x24xf32, #tpu.memory_space<vmem>>, vector<16x24xf32>
    %c0_11 = arith.constant 0 : index
    %c0_12 = arith.constant 0 : index
    %11 = vector.load %arg8[%c0_11, %c0_12] : memref<24x32xf32, #tpu.memory_space<vmem>>, vector<24x32xf32>
    %cst_13 = arith.constant dense<0.000000e+00> : vector<16x32xf32>
    %12 = tpu.matmul %10, %11, %cst_13 {dimension_numbers = #tpu.dot_dimension_numbers<[1], [0], [0], [1], [0, 0, 1, 1], [], []>} : vector<16x24xf32>, vector<24x32xf32>, vector<16x32xf32> -> vector<16x32xf32>
    %c0_14 = arith.constant 0 : index
    %c0_15 = arith.constant 0 : index
    %13 = vector.load %arg11[%c0_14, %c0_15] : memref<1x32xf32, #tpu.memory_space<vmem>>, vector<1x32xf32>
    %14 = vector.broadcast %13 : vector<1x32xf32> to vector<16x32xf32>
    %15 = arith.addf %12, %14 : vector<16x32xf32>
    %cst_16 = arith.constant 0.000000e+00 : f32
    %16 = vector.broadcast %cst_16 : f32 to vector<16x32xf32>
    %17 = arith.maximumf %15, %16 : vector<16x32xf32>
    %c32 = arith.constant 32 : index
    %c0_17 = arith.constant 0 : index
    %18 = vector.load %arg13[%c32, %c0_17] : memref<96x128xf32, #tpu.memory_space<vmem>>, vector<32x128xf32>
    %cst_18 = arith.constant dense<0.000000e+00> : vector<16x128xf32>
    %19 = tpu.matmul %17, %18, %cst_18 {dimension_numbers = #tpu.dot_dimension_numbers<[1], [0], [0], [1], [0, 0, 1, 1], [], []>} : vector<16x32xf32>, vector<32x128xf32>, vector<16x128xf32> -> vector<16x128xf32>
    %20 = arith.addf %9, %19 : vector<16x128xf32>
    %c0_19 = arith.constant 0 : index
    %c0_20 = arith.constant 0 : index
    %21 = vector.load %arg3[%c0_19, %c0_20] : memref<16x16xf32, #tpu.memory_space<vmem>>, vector<16x16xf32>
    %c0_21 = arith.constant 0 : index
    %c0_22 = arith.constant 0 : index
    %22 = vector.load %arg9[%c0_21, %c0_22] : memref<16x32xf32, #tpu.memory_space<vmem>>, vector<16x32xf32>
    %cst_23 = arith.constant dense<0.000000e+00> : vector<16x32xf32>
    %23 = tpu.matmul %21, %22, %cst_23 {dimension_numbers = #tpu.dot_dimension_numbers<[1], [0], [0], [1], [0, 0, 1, 1], [], []>} : vector<16x16xf32>, vector<16x32xf32>, vector<16x32xf32> -> vector<16x32xf32>
    %c0_24 = arith.constant 0 : index
    %c0_25 = arith.constant 0 : index
    %24 = vector.load %arg12[%c0_24, %c0_25] : memref<1x32xf32, #tpu.memory_space<vmem>>, vector<1x32xf32>
    %25 = vector.broadcast %24 : vector<1x32xf32> to vector<16x32xf32>
    %26 = arith.addf %23, %25 : vector<16x32xf32>
    %cst_26 = arith.constant 0.000000e+00 : f32
    %27 = vector.broadcast %cst_26 : f32 to vector<16x32xf32>
    %28 = arith.maximumf %26, %27 : vector<16x32xf32>
    %c64 = arith.constant 64 : index
    %c0_27 = arith.constant 0 : index
    %29 = vector.load %arg13[%c64, %c0_27] : memref<96x128xf32, #tpu.memory_space<vmem>>, vector<32x128xf32>
    %cst_28 = arith.constant dense<0.000000e+00> : vector<16x128xf32>
    %30 = tpu.matmul %28, %29, %cst_28 {dimension_numbers = #tpu.dot_dimension_numbers<[1], [0], [0], [1], [0, 0, 1, 1], [], []>} : vector<16x32xf32>, vector<32x128xf32>, vector<16x128xf32> -> vector<16x128xf32>
    %31 = arith.addf %20, %30 : vector<16x128xf32>
    %c0_29 = arith.constant 0 : index
    %c0_30 = arith.constant 0 : index
    %32 = vector.load %arg14[%c0_29, %c0_30] : memref<1x128xf32, #tpu.memory_space<vmem>>, vector<1x128xf32>
    %33 = vector.broadcast %32 : vector<1x128xf32> to vector<16x128xf32>
    %34 = arith.addf %31, %33 : vector<16x128xf32>
    %c0_31 = arith.constant 0 : index
    %c0_32 = arith.constant 0 : index
    %35 = vector.load %arg15[%c0_31, %c0_32] : memref<128x32xf32, #tpu.memory_space<vmem>>, vector<128x32xf32>
    %cst_33 = arith.constant dense<0.000000e+00> : vector<16x32xf32>
    %36 = tpu.matmul %34, %35, %cst_33 {dimension_numbers = #tpu.dot_dimension_numbers<[1], [0], [0], [1], [0, 0, 1, 1], [], []>} : vector<16x128xf32>, vector<128x32xf32>, vector<16x32xf32> -> vector<16x32xf32>
    %c0_34 = arith.constant 0 : index
    %c0_35 = arith.constant 0 : index
    %37 = vector.load %arg16[%c0_34, %c0_35] : memref<1x32xf32, #tpu.memory_space<vmem>>, vector<1x32xf32>
    %38 = vector.broadcast %37 : vector<1x32xf32> to vector<16x32xf32>
    %39 = arith.addf %36, %38 : vector<16x32xf32>
    %cst_36 = arith.constant 0.000000e+00 : f32
    %40 = vector.broadcast %cst_36 : f32 to vector<16x32xf32>
    %41 = arith.maximumf %39, %40 : vector<16x32xf32>
    %c0_37 = arith.constant 0 : index
    %c0_38 = arith.constant 0 : index
    %42 = vector.load %arg17[%c0_37, %c0_38] : memref<32x128xf32, #tpu.memory_space<vmem>>, vector<32x128xf32>
    %cst_39 = arith.constant dense<0.000000e+00> : vector<16x128xf32>
    %43 = tpu.matmul %41, %42, %cst_39 {dimension_numbers = #tpu.dot_dimension_numbers<[1], [0], [0], [1], [0, 0, 1, 1], [], []>} : vector<16x32xf32>, vector<32x128xf32>, vector<16x128xf32> -> vector<16x128xf32>
    %c0_40 = arith.constant 0 : index
    %c0_41 = arith.constant 0 : index
    %44 = vector.load %arg4[%c0_40, %c0_41] : memref<16x16xf32, #tpu.memory_space<vmem>>, vector<16x16xf32>
    %c0_42 = arith.constant 0 : index
    %c0_43 = arith.constant 0 : index
    %45 = vector.load %arg7[%c0_42, %c0_43] : memref<16x32xf32, #tpu.memory_space<vmem>>, vector<16x32xf32>
    %cst_44 = arith.constant dense<0.000000e+00> : vector<16x32xf32>
    %46 = tpu.matmul %44, %45, %cst_44 {dimension_numbers = #tpu.dot_dimension_numbers<[1], [0], [0], [1], [0, 0, 1, 1], [], []>} : vector<16x16xf32>, vector<16x32xf32>, vector<16x32xf32> -> vector<16x32xf32>
    %c0_45 = arith.constant 0 : index
    %c0_46 = arith.constant 0 : index
    %47 = vector.load %arg10[%c0_45, %c0_46] : memref<1x32xf32, #tpu.memory_space<vmem>>, vector<1x32xf32>
    %48 = vector.broadcast %47 : vector<1x32xf32> to vector<16x32xf32>
    %49 = arith.addf %46, %48 : vector<16x32xf32>
    %cst_47 = arith.constant 0.000000e+00 : f32
    %50 = vector.broadcast %cst_47 : f32 to vector<16x32xf32>
    %51 = arith.maximumf %49, %50 : vector<16x32xf32>
    %c0_48 = arith.constant 0 : index
    %c0_49 = arith.constant 0 : index
    %52 = vector.load %arg13[%c0_48, %c0_49] : memref<96x128xf32, #tpu.memory_space<vmem>>, vector<32x128xf32>
    %cst_50 = arith.constant dense<0.000000e+00> : vector<16x128xf32>
    %53 = tpu.matmul %51, %52, %cst_50 {dimension_numbers = #tpu.dot_dimension_numbers<[1], [0], [0], [1], [0, 0, 1, 1], [], []>} : vector<16x32xf32>, vector<32x128xf32>, vector<16x128xf32> -> vector<16x128xf32>
    %c0_51 = arith.constant 0 : index
    %c0_52 = arith.constant 0 : index
    %54 = vector.load %arg5[%c0_51, %c0_52] : memref<16x24xf32, #tpu.memory_space<vmem>>, vector<16x24xf32>
    %c0_53 = arith.constant 0 : index
    %c0_54 = arith.constant 0 : index
    %55 = vector.load %arg8[%c0_53, %c0_54] : memref<24x32xf32, #tpu.memory_space<vmem>>, vector<24x32xf32>
    %cst_55 = arith.constant dense<0.000000e+00> : vector<16x32xf32>
    %56 = tpu.matmul %54, %55, %cst_55 {dimension_numbers = #tpu.dot_dimension_numbers<[1], [0], [0], [1], [0, 0, 1, 1], [], []>} : vector<16x24xf32>, vector<24x32xf32>, vector<16x32xf32> -> vector<16x32xf32>
    %c0_56 = arith.constant 0 : index
    %c0_57 = arith.constant 0 : index
    %57 = vector.load %arg11[%c0_56, %c0_57] : memref<1x32xf32, #tpu.memory_space<vmem>>, vector<1x32xf32>
    %58 = vector.broadcast %57 : vector<1x32xf32> to vector<16x32xf32>
    %59 = arith.addf %56, %58 : vector<16x32xf32>
    %cst_58 = arith.constant 0.000000e+00 : f32
    %60 = vector.broadcast %cst_58 : f32 to vector<16x32xf32>
    %61 = arith.maximumf %59, %60 : vector<16x32xf32>
    %c32_59 = arith.constant 32 : index
    %c0_60 = arith.constant 0 : index
    %62 = vector.load %arg13[%c32_59, %c0_60] : memref<96x128xf32, #tpu.memory_space<vmem>>, vector<32x128xf32>
    %cst_61 = arith.constant dense<0.000000e+00> : vector<16x128xf32>
    %63 = tpu.matmul %61, %62, %cst_61 {dimension_numbers = #tpu.dot_dimension_numbers<[1], [0], [0], [1], [0, 0, 1, 1], [], []>} : vector<16x32xf32>, vector<32x128xf32>, vector<16x128xf32> -> vector<16x128xf32>
    %64 = arith.addf %53, %63 : vector<16x128xf32>
    %c0_62 = arith.constant 0 : index
    %c0_63 = arith.constant 0 : index
    %65 = vector.load %arg6[%c0_62, %c0_63] : memref<16x16xf32, #tpu.memory_space<vmem>>, vector<16x16xf32>
    %c0_64 = arith.constant 0 : index
    %c0_65 = arith.constant 0 : index
    %66 = vector.load %arg9[%c0_64, %c0_65] : memref<16x32xf32, #tpu.memory_space<vmem>>, vector<16x32xf32>
    %cst_66 = arith.constant dense<0.000000e+00> : vector<16x32xf32>
    %67 = tpu.matmul %65, %66, %cst_66 {dimension_numbers = #tpu.dot_dimension_numbers<[1], [0], [0], [1], [0, 0, 1, 1], [], []>} : vector<16x16xf32>, vector<16x32xf32>, vector<16x32xf32> -> vector<16x32xf32>
    %c0_67 = arith.constant 0 : index
    %c0_68 = arith.constant 0 : index
    %68 = vector.load %arg12[%c0_67, %c0_68] : memref<1x32xf32, #tpu.memory_space<vmem>>, vector<1x32xf32>
    %69 = vector.broadcast %68 : vector<1x32xf32> to vector<16x32xf32>
    %70 = arith.addf %67, %69 : vector<16x32xf32>
    %cst_69 = arith.constant 0.000000e+00 : f32
    %71 = vector.broadcast %cst_69 : f32 to vector<16x32xf32>
    %72 = arith.maximumf %70, %71 : vector<16x32xf32>
    %c64_70 = arith.constant 64 : index
    %c0_71 = arith.constant 0 : index
    %73 = vector.load %arg13[%c64_70, %c0_71] : memref<96x128xf32, #tpu.memory_space<vmem>>, vector<32x128xf32>
    %cst_72 = arith.constant dense<0.000000e+00> : vector<16x128xf32>
    %74 = tpu.matmul %72, %73, %cst_72 {dimension_numbers = #tpu.dot_dimension_numbers<[1], [0], [0], [1], [0, 0, 1, 1], [], []>} : vector<16x32xf32>, vector<32x128xf32>, vector<16x128xf32> -> vector<16x128xf32>
    %75 = arith.addf %64, %74 : vector<16x128xf32>
    %c0_73 = arith.constant 0 : index
    %c0_74 = arith.constant 0 : index
    %76 = vector.load %arg14[%c0_73, %c0_74] : memref<1x128xf32, #tpu.memory_space<vmem>>, vector<1x128xf32>
    %77 = vector.broadcast %76 : vector<1x128xf32> to vector<16x128xf32>
    %78 = arith.addf %75, %77 : vector<16x128xf32>
    %c0_75 = arith.constant 0 : index
    %c0_76 = arith.constant 0 : index
    %79 = vector.load %arg15[%c0_75, %c0_76] : memref<128x32xf32, #tpu.memory_space<vmem>>, vector<128x32xf32>
    %cst_77 = arith.constant dense<0.000000e+00> : vector<16x32xf32>
    %80 = tpu.matmul %78, %79, %cst_77 {dimension_numbers = #tpu.dot_dimension_numbers<[1], [0], [0], [1], [0, 0, 1, 1], [], []>} : vector<16x128xf32>, vector<128x32xf32>, vector<16x32xf32> -> vector<16x32xf32>
    %c0_78 = arith.constant 0 : index
    %c0_79 = arith.constant 0 : index
    %81 = vector.load %arg16[%c0_78, %c0_79] : memref<1x32xf32, #tpu.memory_space<vmem>>, vector<1x32xf32>
    %82 = vector.broadcast %81 : vector<1x32xf32> to vector<16x32xf32>
    %83 = arith.addf %80, %82 : vector<16x32xf32>
    %cst_80 = arith.constant 0.000000e+00 : f32
    %84 = vector.broadcast %cst_80 : f32 to vector<16x32xf32>
    %85 = arith.maximumf %83, %84 : vector<16x32xf32>
    %c0_81 = arith.constant 0 : index
    %c0_82 = arith.constant 0 : index
    %86 = vector.load %arg18[%c0_81, %c0_82] : memref<32x128xf32, #tpu.memory_space<vmem>>, vector<32x128xf32>
    %cst_83 = arith.constant dense<0.000000e+00> : vector<16x128xf32>
    %87 = tpu.matmul %85, %86, %cst_83 {dimension_numbers = #tpu.dot_dimension_numbers<[1], [0], [0], [1], [0, 0, 1, 1], [], []>} : vector<16x32xf32>, vector<32x128xf32>, vector<16x128xf32> -> vector<16x128xf32>
    %88 = arith.addf %43, %87 : vector<16x128xf32>
    %c0_84 = arith.constant 0 : index
    %c0_85 = arith.constant 0 : index
    %89 = vector.load %arg19[%c0_84, %c0_85] : memref<1x128xf32, #tpu.memory_space<vmem>>, vector<1x128xf32>
    %90 = vector.broadcast %89 : vector<1x128xf32> to vector<16x128xf32>
    %91 = arith.addf %88, %90 : vector<16x128xf32>
    %c0_86 = arith.constant 0 : index
    %c0_87 = arith.constant 0 : index
    %92 = vector.load %arg20[%c0_86, %c0_87] : memref<16x128xf32, #tpu.memory_space<vmem>>, vector<16x128xf32>
    tpu.vector_store %arg20[%c0_86, %c0_87], %91 {strides = array<i32>} : memref<16x128xf32, #tpu.memory_space<vmem>>, vector<16x128xf32>,
    return
  }
  func.func @transform_0(%arg0: i32) -> (i32, i32) {
    %c0_i32 = arith.constant 0 : i32
    %c0_i32_0 = arith.constant 0 : i32
    return %arg0, %c0_i32 : i32, i32
  }
  func.func @transform_1(%arg0: i32) -> (i32, i32) {
    %c0_i32 = arith.constant 0 : i32
    %c0_i32_0 = arith.constant 0 : i32
    return %arg0, %c0_i32 : i32, i32
  }
  func.func @transform_2(%arg0: i32) -> (i32, i32) {
    %c0_i32 = arith.constant 0 : i32
    %c0_i32_0 = arith.constant 0 : i32
    return %arg0, %c0_i32 : i32, i32
  }
  func.func @transform_3(%arg0: i32) -> (i32, i32) {
    %c0_i32 = arith.constant 0 : i32
    %c0_i32_0 = arith.constant 0 : i32
    return %arg0, %c0_i32 : i32, i32
  }
  func.func @transform_4(%arg0: i32) -> (i32, i32) {
    %c0_i32 = arith.constant 0 : i32
    %c0_i32_0 = arith.constant 0 : i32
    return %arg0, %c0_i32 : i32, i32
  }
  func.func @transform_5(%arg0: i32) -> (i32, i32) {
    %c0_i32 = arith.constant 0 : i32
    %c0_i32_0 = arith.constant 0 : i32
    return %arg0, %c0_i32 : i32, i32
  }
  func.func @transform_6(%arg0: i32) -> (i32, i32) {
    %c0_i32 = arith.constant 0 : i32
    %c0_i32_0 = arith.constant 0 : i32
    %c0_i32_1 = arith.constant 0 : i32
    return %c0_i32, %c0_i32_0 : i32, i32
  }
  func.func @transform_7(%arg0: i32) -> (i32, i32) {
    %c0_i32 = arith.constant 0 : i32
    %c0_i32_0 = arith.constant 0 : i32
    %c0_i32_1 = arith.constant 0 : i32
    return %c0_i32, %c0_i32_0 : i32, i32
  }
  func.func @transform_8(%arg0: i32) -> (i32, i32) {
    %c0_i32 = arith.constant 0 : i32
    %c0_i32_0 = arith.constant 0 : i32
    %c0_i32_1 = arith.constant 0 : i32
    return %c0_i32, %c0_i32_0 : i32, i32
  }
  func.func @transform_9(%arg0: i32) -> (i32, i32) {
    %c0_i32 = arith.constant 0 : i32
    %c0_i32_0 = arith.constant 0 : i32
    %c0_i32_1 = arith.constant 0 : i32
    return %c0_i32, %c0_i32_0 : i32, i32
  }
  func.func @transform_10(%arg0: i32) -> (i32, i32) {
    %c0_i32 = arith.constant 0 : i32
    %c0_i32_0 = arith.constant 0 : i32
    %c0_i32_1 = arith.constant 0 : i32
    return %c0_i32, %c0_i32_0 : i32, i32
  }
  func.func @transform_11(%arg0: i32) -> (i32, i32) {
    %c0_i32 = arith.constant 0 : i32
    %c0_i32_0 = arith.constant 0 : i32
    %c0_i32_1 = arith.constant 0 : i32
    return %c0_i32, %c0_i32_0 : i32, i32
  }
  func.func @transform_12(%arg0: i32) -> (i32, i32) {
    %c0_i32 = arith.constant 0 : i32
    %c0_i32_0 = arith.constant 0 : i32
    %c0_i32_1 = arith.constant 0 : i32
    return %c0_i32, %c0_i32_0 : i32, i32
  }
  func.func @transform_13(%arg0: i32) -> (i32, i32) {
    %c0_i32 = arith.constant 0 : i32
    %c0_i32_0 = arith.constant 0 : i32
    %c0_i32_1 = arith.constant 0 : i32
    return %c0_i32, %c0_i32_0 : i32, i32
  }
  func.func @transform_14(%arg0: i32) -> (i32, i32) {
    %c0_i32 = arith.constant 0 : i32
    %c0_i32_0 = arith.constant 0 : i32
    %c0_i32_1 = arith.constant 0 : i32
    return %c0_i32, %c0_i32_0 : i32, i32
  }
  func.func @transform_15(%arg0: i32) -> (i32, i32) {
    %c0_i32 = arith.constant 0 : i32
    %c0_i32_0 = arith.constant 0 : i32
    %c0_i32_1 = arith.constant 0 : i32
    return %c0_i32, %c0_i32_0 : i32, i32
  }
  func.func @transform_16(%arg0: i32) -> (i32, i32) {
    %c0_i32 = arith.constant 0 : i32
    %c0_i32_0 = arith.constant 0 : i32
    %c0_i32_1 = arith.constant 0 : i32
    return %c0_i32, %c0_i32_0 : i32, i32
  }
  func.func @transform_17(%arg0: i32) -> (i32, i32) {
    %c0_i32 = arith.constant 0 : i32
    %c0_i32_0 = arith.constant 0 : i32
    %c0_i32_1 = arith.constant 0 : i32
    return %c0_i32, %c0_i32_0 : i32, i32
  }
  func.func @transform_18(%arg0: i32) -> (i32, i32) {
    %c0_i32 = arith.constant 0 : i32
    %c0_i32_0 = arith.constant 0 : i32
    %c0_i32_1 = arith.constant 0 : i32
    return %c0_i32, %c0_i32_0 : i32, i32
  }
  func.func @transform_19(%arg0: i32) -> (i32, i32) {
    %c0_i32 = arith.constant 0 : i32
    %c0_i32_0 = arith.constant 0 : i32
    return %arg0, %c0_i32 : i32, i32
  }
}

</mosaic_0001>

<bundles_post_ra>
// kernel: tpu_custom_call.1
= control target key start
LH: loop header
LB: loop body
LE: loop exit
PB: predicated region body
PF: predicated region fallthrough
CT: control target
= control target key end

     0   :  { %s2715_s0 = inlined_call_operand.vmem [shape: f32[16,16], index: 0, kind: input, shape index: {}]   ;;  %s2716_s1 = inlined_call_operand.hbm [shape: f32[16,24], index: 1, kind: input, shape index: {}]   ;;  %s2717_s2 = inlined_call_operand.hbm [shape: f32[16,16], index: 2, kind: input, shape index: {}]   ;;  %s2718_s3 = inlined_call_operand.hbm [shape: f32[16,16], index: 3, kind: input, shape index: {}]   ;;  %s2719_s4 = inlined_call_operand.hbm [shape: f32[16,24], index: 4, kind: input, shape index: {}]   ;;  %s2720_s5 = inlined_call_operand.hbm [shape: f32[16,16], index: 5, kind: input, shape index: {}]   ;;  %s2721_s6 = inlined_call_operand.hbm [shape: f32[16,32], index: 6, kind: input, shape index: {}]   ;;  %s2722_s7 = inlined_call_operand.hbm [shape: f32[24,32], index: 7, kind: input, shape index: {}]   ;;  %s2723_s8 = inlined_call_operand.hbm [shape: f32[16,32], index: 8, kind: input, shape index: {}]   ;;  %s2724_s9 = inlined_call_operand.vmem [shape: f32[1,32], index: 9, kind: input, shape index: {}]   ;;  %s2725_s10 = inlined_call_operand.vmem [shape: f32[1,32], index: 10, kind: input, shape index: {}]   ;;  %s2726_s11 = inlined_call_operand.vmem [shape: f32[1,32], index: 11, kind: input, shape index: {}]   ;;  %s2727_s12 = inlined_call_operand.vmem [shape: f32[96,128], index: 12, kind: input, shape index: {}]   ;;  %s2728_s13 = inlined_call_operand.vmem [shape: f32[1,128], index: 13, kind: input, shape index: {}]   ;;  %s2729_s14 = inlined_call_operand.vmem [shape: f32[128,32], index: 14, kind: input, shape index: {}]   ;;  %s2730_s15 = inlined_call_operand.vmem [shape: f32[1,32], index: 15, kind: input, shape index: {}]   ;;  %s2731_s16 = inlined_call_operand.vmem [shape: f32[32,128], index: 16, kind: input, shape index: {}]   ;;  %s2732_s17 = inlined_call_operand.vmem [shape: f32[32,128], index: 17, kind: input, shape index: {}]   ;;  %s2733_s18 = inlined_call_operand.vmem [shape: f32[1,128], index: 18, kind: input, shape index: {}]   ;;  %s2734_s19 = inlined_call_operand.hbm [shape: f32[16,128], index: 19, kind: output, shape index: {}]  }
   0x1   :  { %2736 = sst [smem:[#allocation23_spill]] %s2715_s0 }
   0x2   :  { %2737 = sst [smem:[#allocation24_spill]] %s2716_s1 }
   0x3   :  { %2738 = sst [smem:[#allocation25_spill]] %s2717_s2 }
   0x4   :  { %2739 = sst [smem:[#allocation26_spill]] %s2718_s3 }
   0x5   :  { %24 = vsyncpa [#allocation3], 0 }
   0x6   :  { %25 = vsyncpa [#allocation6], 0 }
   0x7   :  { %26 = vsyncpa [#allocation9], 0 }
   0x8   :  { %27 = vsyncpa [#allocation12], 0 }
   0x9   :  { %28 = vsyncpa [#allocation15], 0 }
   0xa   :  { %29 = vsyncpa [#allocation4], 0  ;;  %s2156_s0 = smov [#allocation5]   ;;  %s2157_s20 = smov [#allocation8]  }
   0xb   :  { %s49_s30 = sshll.u32 %s2156_s0, 4  ;;  %s73_s21 = sshll.u32 %s2157_s20, 4  ;;  %s50_s30 = int_to_ptr.vmem [resolvable:$true] %s49_s30  ;;  %s74_s21 = int_to_ptr.vmem [resolvable:$true] %s73_s21 }
   0xc   :  { %s1972_s1 = scalar_lea.vmem %s50_s30, 256  ;;  %p1977_p1 = scmp.lt.s32.totalorder %s50_s30, %s50_s30 }
   0xd   :  { %p1973_p0 = scmp.ne.s32.totalorder %s50_s30, %s1972_s1  ;;  %p1978_p2 = scmp.lt.s32.totalorder %s1972_s1, %s1972_s1 }
   0xf   :  { %p1979_p3 = por %p1978_p2, %p1977_p1 }
  0x11   :  { %p1980_p4 = pnand %p1979_p3, %p1973_p0 }
  0x13   :  { %1983 = shalt.err (!%p1980_p4)
}
  0x14   :  { %s2158_s22 = smov 128   ;;  %s2159_s2 = smov 8  }
  0x15   :  { %s2740_s25 = sld [smem:[#allocation25_spill]]  ;;  %s1992_s3 = scalar_lea.vmem %s74_s21, 256 }
  0x16   :  { %p1993_p5 = scmp.ne.s32.totalorder %s74_s21, %s1992_s3  ;;  %p1997_p6 = scmp.lt.s32.totalorder %s74_s21, %s74_s21 }
  0x17   :  { %p1998_p7 = scmp.lt.s32.totalorder %s1992_s3, %s1992_s3 }
  0x19   :  { %p1999_p8 = por %p1998_p7, %p1997_p6 }
  0x1b   :  { %55 = dma.hbm_to_vmem [thread:$0]  %s2740_s25, 256, %s50_s30, [#allocation6], %s2158_s22, %s2158_s22, %s2159_s2  }
  0x1c   :  { %p2000_p9 = pnand %p1999_p8, %p1993_p5 }
  0x1e   :  { %2003 = shalt.err (!%p2000_p9)
}
  0x1f   :  { %79 = dma.hbm_to_vmem [thread:$0]  %s2719_s4, 256, %s74_s21, [#allocation9], %s2158_s22, %s2158_s22, %s2159_s2  }
  0x20   :  { %s2160_s28 = smov [#allocation11]   ;;  %s2161_s0 = smov [#allocation2]  }
  0x21   :  { %s97_s29 = sshll.u32 %s2160_s28, 4  ;;  %s37_s20 = sshll.u32 %s2161_s0, 4  ;;  %s98_s29 = int_to_ptr.vmem [resolvable:$true] %s97_s29  ;;  %s38_s20 = int_to_ptr.vmem [resolvable:$true] %s37_s20 }
  0x22   :  { %s2012_s30 = scalar_lea.vmem %s98_s29, 256  ;;  %p2017_p11 = scmp.lt.s32.totalorder %s98_s29, %s98_s29 }
  0x23   :  { %p2013_p10 = scmp.ne.s32.totalorder %s98_s29, %s2012_s30  ;;  %p2018_p12 = scmp.lt.s32.totalorder %s2012_s30, %s2012_s30 }
  0x25   :  { %p2019_p13 = por %p2018_p12, %p2017_p11 }
  0x27   :  { %p2020_p0 = pnand %p2019_p13, %p2013_p10 }
  0x29   :  { %2023 = shalt.err (!%p2020_p0)
}
  0x2a   :  { %103 = dma.hbm_to_vmem [thread:$0]  %s2721_s6, 256, %s98_s29, [#allocation12], %s2158_s22, %s2158_s22, %s2159_s2  }
  0x2b   :  { %s2032_s4 = scalar_lea.vmem %s38_s20, 256  ;;  %p2037_p2 = scmp.lt.s32.totalorder %s38_s20, %s38_s20 }
  0x2c   :  { %p2033_p1 = scmp.ne.s32.totalorder %s38_s20, %s2032_s4  ;;  %p2038_p3 = scmp.lt.s32.totalorder %s2032_s4, %s2032_s4 }
  0x2e   :  { %p2039_p4 = por %p2038_p3, %p2037_p2 }
  0x30   :  { %p2040_p5 = pnand %p2039_p4, %p2033_p1 }
  0x32   :  { %2043 = shalt.err (!%p2040_p5)
}
  0x33   :  { %s2741_s25 = sld [smem:[#allocation24_spill]]  ;;  %s2162_s3 = smov [#allocation7]  }
  0x34   :  { %s61_s26 = sshll.u32 %s2162_s3, 4  ;;  %s2163_s27 = smov [#allocation10]   ;;  %s62_s26 = int_to_ptr.vmem [resolvable:$true] %s61_s26 }
  0x35   :  { %s85_s28 = sshll.u32 %s2163_s27, 4  ;;  %s2052_s6 = scalar_lea.vmem %s62_s26, 256  ;;  %s86_s28 = int_to_ptr.vmem [resolvable:$true] %s85_s28 }
  0x36   :  { %p2053_p6 = scmp.ne.s32.totalorder %s62_s26, %s2052_s6  ;;  %p2057_p7 = scmp.lt.s32.totalorder %s62_s26, %s62_s26 }
  0x37   :  { %p2058_p8 = scmp.lt.s32.totalorder %s2052_s6, %s2052_s6 }
  0x39   :  { %43 = dma.hbm_to_vmem [thread:$0]  %s2741_s25, 256, %s38_s20, [#allocation3], %s2158_s22, %s2158_s22, %s2159_s2  }
  0x3a   :  { %p2059_p9 = por %p2058_p8, %p2057_p7 }
  0x3c   :  { %p2060_p10 = pnand %p2059_p9, %p2053_p6 }
  0x3e   :  { %2063 = shalt.err (!%p2060_p10)
}
  0x3f   :  { %s2742_s30 = sld [smem:[#allocation26_spill]]  ;;  %s2072_s20 = scalar_lea.vmem %s86_s28, 256 }
  0x40   :  { %p2073_p11 = scmp.ne.s32.totalorder %s86_s28, %s2072_s20  ;;  %p2077_p12 = scmp.lt.s32.totalorder %s86_s28, %s86_s28 }
  0x41   :  { %p2078_p13 = scmp.lt.s32.totalorder %s2072_s20, %s2072_s20 }
  0x43   :  { %p2079_p0 = por %p2078_p13, %p2077_p12 }
  0x45   :  { %67 = dma.hbm_to_vmem [thread:$0]  %s2742_s30, 256, %s62_s26, [#allocation6], %s2158_s22, %s2158_s22, %s2159_s2  }
  0x46   :  { %p2080_p1 = pnand %p2079_p0, %p2073_p11 }
  0x48   :  { %2083 = shalt.err (!%p2080_p1)
}
  0x49   :  { %91 = dma.hbm_to_vmem [thread:$0]  %s2720_s5, 256, %s86_s28, [#allocation9], %s2158_s22, %s2158_s22, %s2159_s2  }
  0x4a   :  { %s2164_s4 = smov [#allocation13]   ;;  %s2165_s24 = smov [#allocation14]  }
  0x4b   :  { %s109_s21 = sshll.u32 %s2164_s4, 4  ;;  %s121_s25 = sshll.u32 %s2165_s24, 4  ;;  %s110_s21 = int_to_ptr.vmem [resolvable:$true] %s109_s21  ;;  %s122_s25 = int_to_ptr.vmem [resolvable:$true] %s121_s25 }
  0x4c   :  { %s2092_s3 = scalar_lea.vmem %s110_s21, 384  ;;  %p2097_p3 = scmp.lt.s32.totalorder %s110_s21, %s110_s21 }
  0x4d   :  { %p2093_p2 = scmp.ne.s32.totalorder %s110_s21, %s2092_s3  ;;  %p2098_p4 = scmp.lt.s32.totalorder %s2092_s3, %s2092_s3 }
  0x4f   :  { %p2099_p5 = por %p2098_p4, %p2097_p3 }
  0x51   :  { %p2100_p6 = pnand %p2099_p5, %p2093_p2 }
  0x53   :  { %2103 = shalt.err (!%p2100_p6)
}
  0x54   :  { %115 = dma.hbm_to_vmem [thread:$0]  %s2722_s7, 384, %s110_s21, [#allocation12], %s2158_s22, %s2158_s22, %s2159_s2  }
  0x55   :  { %s2112_s5 = scalar_lea.vmem %s122_s25, 256  ;;  %p2117_p8 = scmp.lt.s32.totalorder %s122_s25, %s122_s25 }
  0x56   :  { %p2113_p7 = scmp.ne.s32.totalorder %s122_s25, %s2112_s5  ;;  %p2118_p9 = scmp.lt.s32.totalorder %s2112_s5, %s2112_s5 }
  0x58   :  { %p2119_p10 = por %p2118_p9, %p2117_p8 }
  0x5a   :  { %p2120_p11 = pnand %p2119_p10, %p2113_p7 }
  0x5c   :  { %2123 = shalt.err (!%p2120_p11)
}
  0x5d   :  { %127 = dma.hbm_to_vmem [thread:$0]  %s2723_s8, 256, %s122_s25, [#allocation15], %s2158_s22, %s2158_s22, %s2159_s2  }
  0x5e   :  { %2144 = dma.done.wait [#allocation3], 256  }
  0x5f   :  { %2145 = vsyncadd [#allocation3], 4294967040 }
  0x60   :  { %2146 = dma.done.wait [#allocation6], 512  }
  0x61   :  { %2147 = vsyncadd [#allocation6], 4294966784 }
  0x62   :  { %2148 = dma.done.wait [#allocation9], 512  }
  0x63   :  { %2149 = vsyncadd [#allocation9], 4294966784 }
  0x64   :  { %2150 = dma.done.wait [#allocation12], 640  }
  0x65   :  { %2151 = vsyncadd [#allocation12], 4294966656 }
  0x66   :  { %2152 = dma.done.wait [#allocation15], 256  }
  0x67   :  { %2153 = vsyncadd [#allocation15], 4294967040  ;;  %vm183_vm0 = vcmask 130048   ;;  %v2315_v0 = vld [vmem:[#allocation11 + $0x8] sm:$0xff]  ;;  %v2317_v1 = vld [vmem:[#allocation11] sm:$0xff]  ;;  %s2743_s0 = sld [smem:[#allocation23_spill]] }
  0x68   :  { %1749 = vmatprep.subr.mxu1 %v2315_v0  ;;  %v2328_v4 = vld [vmem:[#allocation13 + $0x10] sm:$0xff]  ;;  %v271_v5 = vld [vmem:[#allocation2] sm:$0xff]  ;;  %vm283_vm1 = vcmask 195584   ;;  %v2332_v6 = vld [vmem:[#allocation13 + $0x8] sm:$0xff]  ;;  %vm371_vm2 = vcmask 261120  }
  0x69   :  { %1750 = vmatpush3.msra.mxu1 %v2315_v0  ;;  %v2337_v7 = vld [vmem:[#allocation13] sm:$0xff]  ;;  %v272_v8 = vld [vmem:[#allocation2 + $0x8] sm:$0xff]  ;;  %v2348_v9 = vld [vmem:[%s2727_s12 + $0x18] sm:$0xff] }
  0x6a   :  { %1751 = vmatprep.subr.mxu1 %v2317_v1  ;;  %v2355_v10 = vld [vmem:[%s2727_s12 + $0x10] sm:$0xff]  ;;  %v2362_v11 = vld [vmem:[%s2727_s12 + $0x8] sm:$0xff]  ;;  %v2368_v12 = vld [vmem:[%s2727_s12 + $0x38] sm:$0xff] }
  0x6b   :  { %1752 = vmatpush3.msra.mxu1 %v2317_v1  ;;  %v2374_v13 = vld [vmem:[%s2727_s12] sm:$0xff]  ;;  %1765 = vmatprep.subr.mxu0 %v2368_v12  ;;  %v2382_v14 = vld [vmem:[%s2727_s12 + $0x30] sm:$0xff]  ;;  %v2390_v15 = vld [vmem:[%s2727_s12 + $0x28] sm:$0xff] }
  0x6c   :  { %1756 = vmatprep.subr.mxu1 %v2328_v4  ;;  %1766 = vmatpush3.msra.mxu0 %v2368_v12  ;;  %v2397_v16 = vld [vmem:[%s2727_s12 + $0x20] sm:$0xff]  ;;  %v534_v32 = vld [vmem:[#allocation5] sm:$0xff]  ;;  %v2421_v33 = vld [vmem:[#allocation14] sm:$0xff] }
  0x6d   :  { %v172_v2 = vld [vmem:[%s2743_s0] sm:$0xff]  ;;  %v173_v3 = vld [vmem:[%s2743_s0 + $0x8] sm:$0xff]  ;;  %1767 = vmatprep.subr.mxu0 %v2382_v14  ;;  %v535_v34 = vld [vmem:[#allocation5 + $0x8] sm:$0xff]  ;;  %s2166_s0 = smov [#allocation16]  }
  0x6e   :  { %1753 = vmatprep.mubr.msk.f32.mxu1 %vm183_vm0, %v172_v2  ;;  %1768 = vmatpush3.msra.mxu0 %v2382_v14  ;;  %v2401_v17 = vld [vmem:[#allocation14 + $0x8] sm:$0xff]  ;;  %v2432_v35 = vld [vmem:[%s2727_s12 + $0x58] sm:$0xff]  ;;  %v2439_v36 = vld [vmem:[%s2727_s12 + $0x50] sm:$0xff]  ;;  %s1589_s8 = sshll.u32 %s2166_s0, 4  ;;  %s1590_s8 = int_to_ptr.vmem [resolvable:$true] %s1589_s8 }
  0x6f   :  { %1754 = vmatmul.mubr.msk.f32.vlgmr.msra.gmra.mxu1 %vm183_vm0, %v173_v3  ;;  %1769 = vmatprep.subr.mxu0 %v2390_v15  ;;  %v2407_v18 = vld [vmem:[%s2724_s9] ss:$0 sm:$0xff]  ;;  %v2446_v37 = vld [vmem:[%s2727_s12 + $0x48] sm:$0xff]  ;;  %v2461_v39 = vld [vmem:[%s2729_s14 + $0x78] sm:$0xff]  ;;  %p2129_p13 = scmp.lt.s32.totalorder %s1590_s8, %s1590_s8 }
  0x70   :  { %1757 = vmatpush3.msra.mxu1 %v2328_v4  ;;  %1762 = vmatprep.mubr.msk.f32.mxu1 %vm283_vm1, %v271_v5  ;;  %v2414_v24 = vld [vmem:[%s2725_s10] ss:$0 sm:$0xff]  ;;  %v2468_v40 = vld [vmem:[%s2729_s14 + $0x70] sm:$0xff]  ;;  %v2475_v41 = vld [vmem:[%s2729_s14 + $0x68] sm:$0xff] }
  0x71   :  { %1758 = vmatprep.subr.mxu1 %v2332_v6  ;;  %1770 = vmatpush3.msra.mxu0 %v2390_v15  ;;  %v2453_v38 = vld [vmem:[%s2727_s12 + $0x40] sm:$0xff]  ;;  %v2487_v43 = vld [vmem:[%s2729_s14 + $0x58] sm:$0xff]  ;;  %v2494_v44 = vld [vmem:[%s2729_s14 + $0x50] sm:$0xff] }
  0x72   :  { %1759 = vmatpush3.msra.mxu1 %v2332_v6  ;;  %1771 = vmatprep.subr.mxu0 %v2397_v16  ;;  %v2482_v42 = vld [vmem:[%s2729_s14 + $0x60] sm:$0xff]  ;;  %v2501_v45 = vld [vmem:[%s2729_s14 + $0x48] sm:$0xff]  ;;  %v2515_v47 = vld [vmem:[%s2729_s14 + $0x38] sm:$0xff] }
  0x73   :  { %1760 = vmatprep.subr.mxu1 %v2337_v7  ;;  %1772 = vmatpush3.msra.mxu0 %v2397_v16  ;;  %v2508_v46 = vld [vmem:[%s2729_s14 + $0x40] sm:$0xff]  ;;  %v2522_v48 = vld [vmem:[%s2729_s14 + $0x30] sm:$0xff]  ;;  %v2529_v49 = vld [vmem:[%s2729_s14 + $0x28] sm:$0xff] }
  0x74   :  { %1761 = vmatpush3.msra.mxu1 %v2337_v7  ;;  %1787 = vmatprep.subr.mxu0 %v2401_v17  ;;  %v2536_v50 = vld [vmem:[%s2729_s14 + $0x20] sm:$0xff]  ;;  %v2543_v51 = vld [vmem:[%s2729_s14 + $0x18] sm:$0xff]  ;;  %v829_v62 = vld [vmem:[#allocation7 + $0x8] sm:$0xff] }
  0x75   :  { %1763 = vmatmul.mubr.msk.f32.vlgmr.msra.gmra.mxu1 %vm283_vm1, %v272_v8  ;;  %1776 = vmatprep.subr.mxu1 %v2348_v9  ;;  %v2552_v54 = vld [vmem:[%s2726_s11] ss:$0 sm:$0xff]  ;;  %v913_v63 = vld [vmem:[#allocation8] sm:$0xff]  ;;  %v2590_v2 = vld [vmem:[%s2729_s14 + $0x8] sm:$0xff] }
  0x76   :  { %1777 = vmatpush3.msra.mxu1 %v2348_v9  ;;  %v828_v61 = vld [vmem:[#allocation7] sm:$0xff] }
  0x77   :  { %1778 = vmatprep.subr.mxu1 %v2355_v10  ;;  %v2597_v3 = vld [vmem:[%s2729_s14] sm:$0xff] }
  0x78   :  { %1779 = vmatpush3.msra.mxu1 %v2355_v10 }
  0x79   :  { %1780 = vmatprep.subr.mxu1 %v2362_v11 }
  0x7a   :  { %1781 = vmatpush3.msra.mxu1 %v2362_v11 }
  0x7b   :  { %1782 = vmatprep.subr.mxu1 %v2374_v13 }
  0x7c   :  { %1783 = vmatpush3.msra.mxu1 %v2374_v13 }
  0x7d   :  { %1794 = vmatprep.subr.mxu1 %v2432_v35 }
 0x12f   :  { %v1755_v19 = vpop.f32.mrf.mxu1 }
 0x130   :  { %v262_v20 = vadd.f32 %v1755_v19, %v2407_v18 }
 0x131   :  { %v256_v21 = vpop.f32.mrf.mxu1 }
 0x132   :  { %v257_v22 = vadd.f32 %v2407_v18, %v256_v21  ;;  %v266_v25 = vmax.f32 %v262_v20, 0.0 }
 0x134   :  { %v265_v23 = vmax.f32 %v257_v22, 0.0  ;;  %v1160_v22 = vld [vmem:[#allocation10] sm:$0xff] }
 0x135   :  { %v1764_v26 = vpop.f32.mrf.mxu1 }
 0x136   :  { %1784 = vmatprep.mubr.msk.f32.mxu1 %vm371_vm2, %v265_v23  ;;  %v362_v27 = vadd.f32 %v1764_v26, %v2414_v24 }
 0x137   :  { %v356_v28 = vpop.f32.mrf.mxu1  ;;  %1785 = vmatmul.mubr.msk.f32.vlgmr.msra.gmra.mxu1 %vm371_vm2, %v266_v25  ;;  %v1161_v25 = vld [vmem:[#allocation10 + $0x8] sm:$0xff] }
 0x138   :  { %v357_v29 = vadd.f32 %v2414_v24, %v356_v28  ;;  %v366_v31 = vmax.f32 %v362_v27, 0.0  ;;  %1795 = vmatpush3.msra.mxu1 %v2432_v35 }
 0x139   :  { %1796 = vmatprep.subr.mxu1 %v2439_v36 }
 0x13a   :  { %v365_v30 = vmax.f32 %v357_v29, 0.0  ;;  %1797 = vmatpush3.msra.mxu1 %v2439_v36 }
 0x13b   :  { %1798 = vmatprep.subr.mxu1 %v2446_v37 }
 0x13c   :  { %1773 = vmatprep.mubr.msk.f32.mxu0 %vm371_vm2, %v365_v30  ;;  %1799 = vmatpush3.msra.mxu1 %v2446_v37 }
 0x13d   :  { %1774 = vmatmul.mubr.msk.f32.vlgmr.msra.gmra.mxu0 %vm371_vm2, %v366_v31  ;;  %1800 = vmatprep.subr.mxu1 %v2453_v38 }
 0x13e   :  { %1788 = vmatpush3.msra.mxu0 %v2401_v17  ;;  %1791 = vmatprep.mubr.msk.f32.mxu0 %vm183_vm0, %v534_v32 }
 0x13f   :  { %1789 = vmatprep.subr.mxu0 %v2421_v33  ;;  %1801 = vmatpush3.msra.mxu1 %v2453_v38 }
 0x140   :  { %1790 = vmatpush3.msra.mxu0 %v2421_v33  ;;  %1840 = vmatprep.subr.mxu1 %v2315_v0 }
 0x141   :  { %1792 = vmatmul.mubr.msk.f32.vlgmr.msra.gmra.mxu0 %vm183_vm0, %v535_v34  ;;  %1805 = vmatprep.subr.mxu0 %v2461_v39 }
 0x142   :  { %1806 = vmatpush3.msra.mxu0 %v2461_v39 }
 0x143   :  { %1807 = vmatprep.subr.mxu0 %v2468_v40 }
 0x144   :  { %1808 = vmatpush3.msra.mxu0 %v2468_v40 }
 0x145   :  { %1809 = vmatprep.subr.mxu0 %v2475_v41 }
 0x146   :  { %1810 = vmatpush3.msra.mxu0 %v2475_v41 }
 0x147   :  { %1811 = vmatprep.subr.mxu0 %v2482_v42 }
 0x148   :  { %1812 = vmatpush3.msra.mxu0 %v2482_v42 }
 0x149   :  { %1813 = vmatprep.subr.mxu0 %v2487_v43 }
 0x14a   :  { %1814 = vmatpush3.msra.mxu0 %v2487_v43 }
 0x14b   :  { %1815 = vmatprep.subr.mxu0 %v2494_v44 }
 0x14c   :  { %1816 = vmatpush3.msra.mxu0 %v2494_v44 }
 0x14d   :  { %1817 = vmatprep.subr.mxu0 %v2501_v45 }
 0x14e   :  { %1818 = vmatpush3.msra.mxu0 %v2501_v45 }
 0x14f   :  { %1819 = vmatprep.subr.mxu0 %v2508_v46 }
 0x150   :  { %1820 = vmatpush3.msra.mxu0 %v2508_v46 }
 0x151   :  { %1821 = vmatprep.subr.mxu0 %v2515_v47 }
 0x152   :  { %1822 = vmatpush3.msra.mxu0 %v2515_v47 }
 0x153   :  { %1823 = vmatprep.subr.mxu0 %v2522_v48 }
 0x154   :  { %1824 = vmatpush3.msra.mxu0 %v2522_v48 }
 0x155   :  { %1825 = vmatprep.subr.mxu0 %v2529_v49 }
 0x156   :  { %1826 = vmatpush3.msra.mxu0 %v2529_v49 }
 0x157   :  { %1827 = vmatprep.subr.mxu0 %v2536_v50 }
 0x158   :  { %1828 = vmatpush3.msra.mxu0 %v2536_v50 }
 0x159   :  { %1829 = vmatprep.subr.mxu0 %v2543_v51 }
 0x15a   :  { %1830 = vmatpush3.msra.mxu0 %v2543_v51 }
 0x1fd   :  { %v1775_v52 = vpop.f32.mrf.mxu0 }
 0x1ff   :  { %v444_v53 = vpop.f32.mrf.mxu0 }
 0x201   :  { %v1793_v55 = vpop.f32.mrf.mxu0 }
 0x202   :  { %v623_v56 = vadd.f32 %v1793_v55, %v2552_v54  ;;  %v1621_v55 = vld [vmem:[%s2730_s15] ss:$0 sm:$0xff] }
 0x203   :  { %v617_v57 = vpop.f32.mrf.mxu0 }
 0x204   :  { %v618_v58 = vadd.f32 %v2552_v54, %v617_v57  ;;  %v627_v60 = vmax.f32 %v623_v56, 0.0 }
 0x206   :  { %v626_v59 = vmax.f32 %v618_v58, 0.0 }
 0x208   :  { %1802 = vmatprep.mubr.msk.f32.mxu1 %vm371_vm2, %v626_v59 }
 0x209   :  { %1803 = vmatmul.mubr.msk.f32.vlgmr.msra.gmra.mxu1 %vm371_vm2, %v627_v60 }
 0x20a   :  { %1841 = vmatpush3.msra.mxu1 %v2315_v0  ;;  %1844 = vmatprep.mubr.msk.f32.mxu1 %vm183_vm0, %v828_v61  ;;  %v914_v0 = vld [vmem:[#allocation8 + $0x8] sm:$0xff] }
 0x20b   :  { %1842 = vmatprep.subr.mxu1 %v2317_v1 }
 0x20c   :  { %1843 = vmatpush3.msra.mxu1 %v2317_v1  ;;  %v2583_v1 = vld [vmem:[%s2729_s14 + $0x10] sm:$0xff] }
 0x20d   :  { %1847 = vmatprep.subr.mxu1 %v2328_v4  ;;  %1845 = vmatmul.mubr.msk.f32.vlgmr.msra.gmra.mxu1 %vm183_vm0, %v829_v62 }
 0x20e   :  { %1848 = vmatpush3.msra.mxu1 %v2328_v4  ;;  %1853 = vmatprep.mubr.msk.f32.mxu1 %vm283_vm1, %v913_v63  ;;  %v1786_v4 = vpop.f32.mrf.mxu1  ;;  %v826_v63 = vld [vmem:[%s2731_s16 + $0x10] sm:$0xff] }
 0x20f   :  { %1849 = vmatprep.subr.mxu1 %v2332_v6  ;;  %1831 = vmatprep.subr.mxu0 %v2583_v1 }
 0x210   :  { %1850 = vmatpush3.msra.mxu1 %v2332_v6  ;;  %1832 = vmatpush3.msra.mxu0 %v2583_v1  ;;  %v525_v5 = vpop.f32.mrf.mxu1  ;;  %v531_v6 = vadd.f32 %v1786_v4, %v1775_v52  ;;  %v1407_v52 = vld [vmem:[%s2732_s17] sm:$0xff] }
 0x211   :  { %1851 = vmatprep.subr.mxu1 %v2337_v7  ;;  %1833 = vmatprep.subr.mxu0 %v2590_v2  ;;  %v526_v8 = vadd.f32 %v525_v5, %v444_v53  ;;  %v827_v53 = vld [vmem:[%s2731_s16 + $0x18] sm:$0xff] }
 0x212   :  { %1852 = vmatpush3.msra.mxu1 %v2337_v7  ;;  %1834 = vmatpush3.msra.mxu0 %v2590_v2 }
 0x213   :  { %1854 = vmatmul.mubr.msk.f32.vlgmr.msra.gmra.mxu1 %vm283_vm1, %v914_v0  ;;  %1856 = vmatprep.subr.mxu1 %v2368_v12  ;;  %v825_v0 = vld [vmem:[%s2731_s16 + $0x8] sm:$0xff] }
 0x214   :  { %1857 = vmatpush3.msra.mxu1 %v2368_v12  ;;  %1835 = vmatprep.subr.mxu0 %v2597_v3 }
 0x215   :  { %1858 = vmatprep.subr.mxu1 %v2382_v14  ;;  %1836 = vmatpush3.msra.mxu0 %v2597_v3 }
 0x216   :  { %1859 = vmatpush3.msra.mxu1 %v2382_v14  ;;  %1878 = vmatprep.subr.mxu0 %v2401_v17 }
 0x217   :  { %1860 = vmatprep.subr.mxu1 %v2390_v15 }
 0x218   :  { %1861 = vmatpush3.msra.mxu1 %v2390_v15  ;;  %v2605_v15 = vld [vmem:[%s2728_s13] ss:$0 sm:$0xff] }
 0x219   :  { %1862 = vmatprep.subr.mxu1 %v2397_v16 }
 0x21a   :  { %1863 = vmatpush3.msra.mxu1 %v2397_v16 }
 0x21b   :  { %1867 = vmatprep.subr.mxu1 %v2348_v9 }
 0x2c9   :  { %v1804_v7 = vpop.f32.mrf.mxu1 }
 0x2ca   :  { %v714_v12 = vadd.f32 %v1804_v7, %v531_v6  ;;  %v1638_v7 = vld [vmem:[%s2733_s18] ss:$0 sm:$0xff] }
 0x2cb   :  { %v704_v14 = vpop.f32.mrf.mxu1 }
 0x2cc   :  { %v713_v16 = vadd.f32 %v704_v14, %v526_v8  ;;  %v723_v21 = vadd.f32 %v2605_v15, %v714_v12 }
 0x2cd   :  { %v1846_v19 = vpop.f32.mrf.mxu1 }
 0x2ce   :  { %v722_v20 = vadd.f32 %v2605_v15, %v713_v16 }
 0x2cf   :  { %v902_v23 = vpop.f32.mrf.mxu1 }
 0x2d0   :  { %1837 = vmatprep.mubr.f32.mxu0 %v722_v20  ;;  %v903_v27 = vadd.f32 %v2407_v18, %v902_v23 }
 0x2d1   :  { %1838 = vmatmul.mubr.f32.vlgmr.msra.gmra.mxu0 %v723_v21 }
 0x2d2   :  { %1879 = vmatpush3.msra.mxu0 %v2401_v17  ;;  %1882 = vmatprep.mubr.msk.f32.mxu0 %vm183_vm0, %v1160_v22  ;;  %v911_v31 = vmax.f32 %v903_v27, 0.0 }
 0x2d3   :  { %1880 = vmatprep.subr.mxu0 %v2421_v33  ;;  %v1855_v26 = vpop.f32.mrf.mxu1 }
 0x2d4   :  { %1881 = vmatpush3.msra.mxu0 %v2421_v33  ;;  %v993_v28 = vadd.f32 %v1855_v26, %v2414_v24  ;;  %v908_v33 = vadd.f32 %v1846_v19, %v2407_v18 }
 0x2d5   :  { %1883 = vmatmul.mubr.msk.f32.vlgmr.msra.gmra.mxu0 %vm183_vm0, %v1161_v25  ;;  %v987_v29 = vpop.f32.mrf.mxu1  ;;  %1896 = vmatprep.subr.mxu0 %v2461_v39 }
 0x2d6   :  { %v988_v30 = vadd.f32 %v2414_v24, %v987_v29  ;;  %1897 = vmatpush3.msra.mxu0 %v2461_v39  ;;  %v997_v17 = vmax.f32 %v993_v28, 0.0  ;;  %v912_v24 = vmax.f32 %v908_v33, 0.0 }
 0x2d7   :  { %1898 = vmatprep.subr.mxu0 %v2468_v40 }
 0x2d8   :  { %v996_v32 = vmax.f32 %v988_v30, 0.0  ;;  %1899 = vmatpush3.msra.mxu0 %v2468_v40 }
 0x2d9   :  { %1900 = vmatprep.subr.mxu0 %v2475_v41 }
 0x2da   :  { %1864 = vmatprep.mubr.msk.f32.mxu1 %vm371_vm2, %v996_v32  ;;  %1901 = vmatpush3.msra.mxu0 %v2475_v41 }
 0x2db   :  { %1865 = vmatmul.mubr.msk.f32.vlgmr.msra.gmra.mxu1 %vm371_vm2, %v997_v17  ;;  %1902 = vmatprep.subr.mxu0 %v2482_v42 }
 0x2dc   :  { %1868 = vmatpush3.msra.mxu1 %v2348_v9  ;;  %1875 = vmatprep.mubr.msk.f32.mxu1 %vm371_vm2, %v911_v31 }
 0x2dd   :  { %1869 = vmatprep.subr.mxu1 %v2355_v10  ;;  %1903 = vmatpush3.msra.mxu0 %v2482_v42 }
 0x2de   :  { %1870 = vmatpush3.msra.mxu1 %v2355_v10  ;;  %1904 = vmatprep.subr.mxu0 %v2487_v43 }
 0x2df   :  { %1871 = vmatprep.subr.mxu1 %v2362_v11  ;;  %1905 = vmatpush3.msra.mxu0 %v2487_v43 }
 0x2e0   :  { %1872 = vmatpush3.msra.mxu1 %v2362_v11  ;;  %1906 = vmatprep.subr.mxu0 %v2494_v44 }
 0x2e1   :  { %1873 = vmatprep.subr.mxu1 %v2374_v13  ;;  %1907 = vmatpush3.msra.mxu0 %v2494_v44 }
 0x2e2   :  { %1874 = vmatpush3.msra.mxu1 %v2374_v13  ;;  %1908 = vmatprep.subr.mxu0 %v2501_v45 }
 0x2e3   :  { %1876 = vmatmul.mubr.msk.f32.vlgmr.msra.gmra.mxu1 %vm371_vm2, %v912_v24  ;;  %1885 = vmatprep.subr.mxu1 %v2432_v35 }
 0x2e4   :  { %1886 = vmatpush3.msra.mxu1 %v2432_v35  ;;  %1909 = vmatpush3.msra.mxu0 %v2501_v45 }
 0x2e5   :  { %1887 = vmatprep.subr.mxu1 %v2439_v36  ;;  %1910 = vmatprep.subr.mxu0 %v2508_v46 }
 0x2e6   :  { %1888 = vmatpush3.msra.mxu1 %v2439_v36  ;;  %1911 = vmatpush3.msra.mxu0 %v2508_v46 }
 0x2e7   :  { %1889 = vmatprep.subr.mxu1 %v2446_v37  ;;  %1912 = vmatprep.subr.mxu0 %v2515_v47 }
 0x2e8   :  { %1890 = vmatpush3.msra.mxu1 %v2446_v37  ;;  %1913 = vmatpush3.msra.mxu0 %v2515_v47  ;;  %v1410_v37 = vld [vmem:[%s2732_s17 + $0x18] sm:$0xff] }
 0x2e9   :  { %1891 = vmatprep.subr.mxu1 %v2453_v38  ;;  %1914 = vmatprep.subr.mxu0 %v2522_v48 }
 0x2ea   :  { %1892 = vmatpush3.msra.mxu1 %v2453_v38  ;;  %1915 = vmatpush3.msra.mxu0 %v2522_v48 }
 0x2eb   :  { %1916 = vmatprep.subr.mxu0 %v2529_v49  ;;  %1931 = vmatprep.subr.mxu1 %v1410_v37 }
 0x2ec   :  { %1917 = vmatpush3.msra.mxu0 %v2529_v49 }
 0x2ed   :  { %1918 = vmatprep.subr.mxu0 %v2536_v50 }
 0x2ee   :  { %1919 = vmatpush3.msra.mxu0 %v2536_v50  ;;  %v1409_v50 = vld [vmem:[%s2732_s17 + $0x10] sm:$0xff] }
 0x2ef   :  { %1920 = vmatprep.subr.mxu0 %v2543_v51 }
 0x2f0   :  { %1921 = vmatpush3.msra.mxu0 %v2543_v51  ;;  %v1408_v51 = vld [vmem:[%s2732_s17 + $0x8] sm:$0xff] }
 0x2f1   :  { %1922 = vmatprep.subr.mxu0 %v2583_v1 }
 0x2f2   :  { %1923 = vmatpush3.msra.mxu0 %v2583_v1 }
 0x2f3   :  { %1924 = vmatprep.subr.mxu0 %v2590_v2 }
 0x2f4   :  { %1925 = vmatpush3.msra.mxu0 %v2590_v2  ;;  %v824_v2 = vld [vmem:[%s2731_s16] sm:$0xff]  ;;  %s2124_s16 = scalar_lea.vmem %s1590_s8, 256 }
 0x2f5   :  { %1926 = vmatprep.subr.mxu0 %v2597_v3  ;;  %p2125_p12 = scmp.ne.s32.totalorder %s1590_s8, %s2124_s16  ;;  %p2130_p0 = scmp.lt.s32.totalorder %s2124_s16, %s2124_s16 }
 0x2f6   :  { %1927 = vmatpush3.msra.mxu0 %v2597_v3 }
 0x2f7   :  { %p2131_p1 = por %p2130_p0, %p2129_p13 }
 0x2f9   :  { %p2132_p2 = pnand %p2131_p1, %p2125_p12 }
 0x391   :  { %v1839_v9 = vpop.f32.mrf.mxu0 }
 0x392   :  { %v819_v1 = vadd.f32 %v1839_v9, %v1621_v55 }
 0x393   :  { %v813_v10 = vpop.f32.mrf.mxu0 }
 0x394   :  { %v814_v58 = vadd.f32 %v1621_v55, %v813_v10  ;;  %v823_v3 = vmax.f32 %v819_v1, 0.0 }
 0x395   :  { %v1884_v11 = vpop.f32.mrf.mxu0 }
 0x396   :  { %v1240_v13 = vadd.f32 %v1884_v11, %v2552_v54  ;;  %v822_v62 = vmax.f32 %v814_v58, 0.0 }
 0x397   :  { %v1234_v18 = vpop.f32.mrf.mxu0 }
 0x398   :  { %v1235_v34 = vadd.f32 %v2552_v54, %v1234_v18  ;;  %v1244_v36 = vmax.f32 %v1240_v13, 0.0 }
 0x39a   :  { %v1243_v35 = vmax.f32 %v1235_v34, 0.0 }
 0x39b   :  { %v1866_v38 = vpop.f32.mrf.mxu1 }
 0x39c   :  { %1893 = vmatprep.mubr.msk.f32.mxu1 %vm371_vm2, %v1243_v35 }
 0x39d   :  { %1894 = vmatmul.mubr.msk.f32.vlgmr.msra.gmra.mxu1 %vm371_vm2, %v1244_v36  ;;  %v1070_v39 = vpop.f32.mrf.mxu1 }
 0x39e   :  { %1932 = vmatpush3.msra.mxu1 %v1410_v37 }
 0x39f   :  { %1933 = vmatprep.subr.mxu1 %v1409_v50 }
 0x3a0   :  { %1934 = vmatpush3.msra.mxu1 %v1409_v50 }
 0x3a1   :  { %1935 = vmatprep.subr.mxu1 %v1408_v51 }
 0x3a2   :  { %1936 = vmatpush3.msra.mxu1 %v1408_v51 }
 0x3a3   :  { %v1877_v40 = vpop.f32.mrf.mxu1  ;;  %1937 = vmatprep.subr.mxu1 %v1407_v52 }
 0x3a4   :  { %v1157_v42 = vadd.f32 %v1877_v40, %v1866_v38  ;;  %1938 = vmatpush3.msra.mxu1 %v1407_v52 }
 0x3a5   :  { %v1151_v41 = vpop.f32.mrf.mxu1  ;;  %1942 = vmatprep.subr.mxu1 %v827_v53 }
 0x3a6   :  { %v1152_v44 = vadd.f32 %v1151_v41, %v1070_v39 }
 0x45d   :  { %v1895_v43 = vpop.f32.mrf.mxu1 }
 0x45e   :  { %v1327_v45 = vadd.f32 %v1895_v43, %v1157_v42 }
 0x45f   :  { %v1317_v46 = vpop.f32.mrf.mxu1 }
 0x460   :  { %v1326_v47 = vadd.f32 %v1317_v46, %v1152_v44  ;;  %v1329_v49 = vadd.f32 %v2605_v15, %v1327_v45 }
 0x462   :  { %v1328_v48 = vadd.f32 %v2605_v15, %v1326_v47 }
 0x464   :  { %1928 = vmatprep.mubr.f32.mxu0 %v1328_v48 }
 0x465   :  { %1929 = vmatmul.mubr.f32.vlgmr.msra.gmra.mxu0 %v1329_v49 }
 0x525   :  { %v1930_v54 = vpop.f32.mrf.mxu0 }
 0x526   :  { %v1402_v56 = vadd.f32 %v1930_v54, %v1621_v55 }
 0x527   :  { %v1396_v57 = vpop.f32.mrf.mxu0 }
 0x528   :  { %v1397_v59 = vadd.f32 %v1621_v55, %v1396_v57  ;;  %v1406_v61 = vmax.f32 %v1402_v56, 0.0 }
 0x52a   :  { %v1405_v60 = vmax.f32 %v1397_v59, 0.0 }
 0x52c   :  { %1939 = vmatprep.mubr.msk.f32.mxu1 %vm371_vm2, %v1405_v60 }
 0x52d   :  { %1940 = vmatmul.mubr.msk.f32.vlgmr.msra.gmra.mxu1 %vm371_vm2, %v1406_v61 }
 0x52e   :  { %1943 = vmatpush3.msra.mxu1 %v827_v53  ;;  %1950 = vmatprep.mubr.msk.f32.mxu1 %vm371_vm2, %v822_v62 }
 0x52f   :  { %1944 = vmatprep.subr.mxu1 %v826_v63 }
 0x530   :  { %1945 = vmatpush3.msra.mxu1 %v826_v63 }
 0x531   :  { %1946 = vmatprep.subr.mxu1 %v825_v0 }
 0x532   :  { %1947 = vmatpush3.msra.mxu1 %v825_v0 }
 0x533   :  { %1948 = vmatprep.subr.mxu1 %v824_v2 }
 0x534   :  { %1949 = vmatpush3.msra.mxu1 %v824_v2 }
 0x535   :  { %1951 = vmatmul.mubr.msk.f32.vlgmr.msra.gmra.mxu1 %vm371_vm2, %v823_v3 }
 0x5ed   :  { %v1941_v4 = vpop.f32.mrf.mxu1 }
 0x5ef   :  { %v1483_v5 = vpop.f32.mrf.mxu1 }
 0x5f5   :  { %v1952_v6 = vpop.f32.mrf.mxu1 }
 0x5f6   :  { %v1570_v8 = vadd.f32 %v1952_v6, %v1941_v4 }
 0x5f7   :  { %v1564_v12 = vpop.f32.mrf.mxu1 }
 0x5f8   :  { %v1581_v14 = vadd.f32 %v1638_v7, %v1570_v8  ;;  %v1565_v15 = vadd.f32 %v1564_v12, %v1483_v5 }
 0x5fa   :  { %1583 = vst [vmem:[#allocation16 + $0x8] sm:$0xff] %v1581_v14  ;;  %v1580_v16 = vadd.f32 %v1638_v7, %v1565_v15 }
 0x5fc   :  { %1582 = vst [vmem:[#allocation16] sm:$0xff] %v1580_v16 }
 0x5fd   :  { %2135 = shalt.err (!%p2132_p2)
}
 0x5fe   :  { %1595 = dma.vmem_to_hbm [thread:$0]  %s1590_s8, 256, %s2734_s19, [#allocation4], %s2158_s22, %s2158_s22, %s2159_s2  }
 0x5ff   :  { %2154 = dma.done.wait [#allocation4], 256  }
 0x600   :  { %2155 = vsyncadd [#allocation4], 4294967040 }
 0x601   :  { %1599 = vsyncpa [#allocation3], 1 }
 0x602   :  { %1600 = vsyncpa [#allocation6], 1 }
 0x603   :  { %1601 = vsyncpa [#allocation9], 1 }
 0x604   :  { %1602 = vsyncpa [#allocation12], 1 }
 0x605   :  { %1603 = vsyncpa [#allocation15], 1 }
 0x606   :  { %1604 = vsyncpa [#allocation4], 1 }

</bundles_post_ra>
